<compile_context>
chip_gen: v5e
topology: v5e:2x2
jax: 0.10.0
libtpu: 0.0.40
codegen_flags: <defaults>
</compile_context>

<pallas_src>
import jax
import jax.numpy as jnp
from jax.experimental import pallas as pl
from jax.experimental.pallas import tpu as pltpu


def ffn_kernel(x_ref, w1_ref, b1_ref, w2_ref, b2_ref, o_ref, acc_ref):
    j = pl.program_id(1)  # hidden-tile index (reduction axis for the 2nd matmul)

    @pl.when(j == 0)
    def _():
        acc_ref[...] = jnp.zeros_like(acc_ref)

    x = x_ref[...]
    # First matmul on the MXU with f32 accumulation, bias + ReLU on the VPU.
    h = jnp.dot(x, w1_ref[...],
                precision=jax.lax.Precision.HIGHEST,
                preferred_element_type=jnp.float32)
    h = jnp.maximum(h + b1_ref[...].astype(jnp.float32), 0.0)
    # Second matmul: accumulate this hidden-tile's contribution into f32 scratch.
    acc_ref[...] += jnp.dot(h.astype(x.dtype), w2_ref[...],
                            precision=jax.lax.Precision.HIGHEST,
                            preferred_element_type=jnp.float32)

    @pl.when(j == pl.num_programs(1) - 1)
    def _():
        o_ref[...] = (acc_ref[...] + b2_ref[...].astype(jnp.float32)).astype(o_ref.dtype)


def _round_up(x, m):
    return ((x + m - 1) // m) * m


def _pick_hidden_tile(h):
    for cand in (2048, 1024, 512, 256, 128):
        if h % cand == 0:
            return cand
    return h  # small hidden dims: take the whole axis in one block


def feed_forward_block(x, w1, b1, w2, b2, *,
                       block_rows=None, block_hidden=None,
                       vmem_budget_bytes=36 * 1024 * 1024):
    """x: (..., E); w1: (E, H); b1: (H,); w2: (H, E); b2: (E,)."""
    orig_shape = x.shape
    emb = orig_shape[-1]
    hidden = w1.shape[1]
    assert w1.shape == (emb, hidden) and w2.shape == (hidden, emb)

    rows = 1
    for d in orig_shape[:-1]:
        rows *= d
    x2 = x.reshape(rows, emb)

    if block_hidden is None:
        block_hidden = _pick_hidden_tile(hidden)
    assert hidden % block_hidden == 0, "hidden tile must divide hidden dim exactly"

    # Large row tiles (review: 256-1024) capped by a generation-safe VMEM budget.
    if block_rows is None:
        block_rows = min(512, _round_up(rows, 8))
    block_rows = max(8, _round_up(block_rows, 8))

    itemsize = jnp.dtype(x.dtype).itemsize

    def vmem_estimate(tm):
        # double-buffered tiles (inputs+output) + persistent f32 accumulator scratch
        tiles = (tm * emb                 # x tile
                 + emb * block_hidden     # w1 tile
                 + block_hidden           # b1 tile
                 + block_hidden * emb     # w2 tile
                 + emb                    # b2 tile
                 + tm * emb)              # out tile
        return 2 * itemsize * tiles + 4 * tm * emb

    while block_rows > 8 and vmem_estimate(block_rows) > vmem_budget_bytes:
        block_rows = max(8, _round_up(block_rows // 2, 8))

    grid = (pl.cdiv(rows, block_rows), hidden // block_hidden)

    b1_2 = b1.reshape(1, hidden)
    b2_2 = b2.reshape(1, emb)

    cp_kwargs = dict(dimension_semantics=("parallel", "arbitrary"))
    est = vmem_estimate(block_rows)
    if est > 30 * 1024 * 1024:
        # Raise the scoped-VMEM limit explicitly but keep headroom under v7x's 64 MiB/TC.
        cp_kwargs["vmem_limit_bytes"] = min(int(est * 1.5), 56 * 1024 * 1024)

    out = pl.pallas_call(
        ffn_kernel,
        out_shape=jax.ShapeDtypeStruct((rows, emb), x.dtype),
        grid_spec=pltpu.PrefetchScalarGridSpec(
            num_scalar_prefetch=0,
            grid=grid,
            in_specs=[
                pl.BlockSpec((block_rows, emb), lambda i, j: (i, 0)),       # x
                pl.BlockSpec((emb, block_hidden), lambda i, j: (0, j)),     # W1
                pl.BlockSpec((1, block_hidden), lambda i, j: (0, j)),       # b1
                pl.BlockSpec((block_hidden, emb), lambda i, j: (j, 0)),     # W2
                pl.BlockSpec((1, emb), lambda i, j: (0, 0)),                # b2
            ],
            out_specs=pl.BlockSpec((block_rows, emb), lambda i, j: (i, 0)),
            scratch_shapes=[pltpu.VMEM((block_rows, emb), jnp.float32)],
        ),
        compiler_params=pltpu.CompilerParams(**cp_kwargs),
    )(x2, w1, b1_2, w2, b2_2)

    return out.reshape(orig_shape)


if __name__ == "__main__":
    batch, seq, inp_dim, hidden = 2, 8, 32, 256
    key = jax.random.PRNGKey(0)
    kx, k1, k2 = jax.random.split(key, 3)

    x = jax.random.normal(kx, (batch, seq, inp_dim), dtype=jnp.float32)

    # Match nn.init.uniform_(-c, c) / zeros_ from the PyTorch module.
    c = (6.0 / (inp_dim + hidden)) ** 0.5
    # PyTorch Linear stores weight as (out, in); we keep the transposed (in, out) layout.
    w1 = jax.random.uniform(k1, (inp_dim, hidden), minval=-c, maxval=c, dtype=jnp.float32)
    b1 = jnp.zeros((hidden,), dtype=jnp.float32)
    w2 = jax.random.uniform(k2, (hidden, inp_dim), minval=-c, maxval=c, dtype=jnp.float32)
    b2 = jnp.zeros((inp_dim,), dtype=jnp.float32)

    # Small explicit tiles here so the test exercises a multi-step (2 x 2) grid,
    # including the hidden-axis accumulator path; real sizes use the auto defaults.
    y = feed_forward_block(x, w1, b1, w2, b2, block_rows=8, block_hidden=128)
    y = jax.block_until_ready(y)

    # Pure-JAX reference (full-precision matmuls to match the kernel's HIGHEST precision).
    h_ref = jnp.maximum(
        jnp.dot(x, w1, precision=jax.lax.Precision.HIGHEST) + b1, 0.0)
    y_ref = jnp.dot(h_ref, w2, precision=jax.lax.Precision.HIGHEST) + b2
    assert jnp.allclose(y, y_ref, atol=1e-5, rtol=1e-5)

    print("KERNEL_OK")
</pallas_src>

<mosaic_0001>
module attributes {stable_mosaic.version = 11 : i64} {
  func.func @ffn_kernel(%arg0: i32, %arg1: i32, %arg2: memref<8x32xf32, #tpu.memory_space<vmem>>, %arg3: memref<32x128xf32, #tpu.memory_space<vmem>>, %arg4: memref<1x128xf32, #tpu.memory_space<vmem>>, %arg5: memref<128x32xf32, #tpu.memory_space<vmem>>, %arg6: memref<1x32xf32, #tpu.memory_space<vmem>>, %arg7: memref<8x32xf32, #tpu.memory_space<vmem>>, %arg8: memref<8x32xf32, #tpu.memory_space<vmem>>) attributes {dimension_semantics = [#tpu.dimension_semantics<parallel>, #tpu.dimension_semantics<arbitrary>], iteration_bounds = array<i64: 2, 2>, scalar_prefetch = 0 : i64, scratch_operands = 1 : i64, tpu.core_type = #tpu.core_type<tc>, window_params = [{transform_indices = @transform_0, window_bounds = array<i64: 8, 32>}, {transform_indices = @transform_1, window_bounds = array<i64: 32, 128>}, {transform_indices = @transform_2, window_bounds = array<i64: 1, 128>}, {transform_indices = @transform_3, window_bounds = array<i64: 128, 32>}, {pipeline_mode = #tpu.pipeline_mode<synchronous>, transform_indices = @transform_4, window_bounds = array<i64: 1, 32>}, {transform_indices = @transform_5, window_bounds = array<i64: 8, 32>}]} {
    %c0_i32 = arith.constant 0 : i32
    %0 = arith.cmpi eq, %arg1, %c0_i32 : i32
    %1 = arith.extui %0 : i1 to i32
    %c0_i32_0 = arith.constant 0 : i32
    %2 = arith.cmpi ne, %1, %c0_i32_0 : i32
    scf.if %2 {
      %cst_15 = arith.constant 0.000000e+00 : f32
      %19 = vector.broadcast %cst_15 : f32 to vector<8x32xf32>
      %c0_16 = arith.constant 0 : index
      %c0_17 = arith.constant 0 : index
      %20 = vector.load %arg8[%c0_16, %c0_17] : memref<8x32xf32, #tpu.memory_space<vmem>>, vector<8x32xf32>
      tpu.vector_store %arg8[%c0_16, %c0_17], %19 {strides = array<i32>} : memref<8x32xf32, #tpu.memory_space<vmem>>, vector<8x32xf32>,
    } else {
    }
    %c0 = arith.constant 0 : index
    %c0_1 = arith.constant 0 : index
    %3 = vector.load %arg2[%c0, %c0_1] : memref<8x32xf32, #tpu.memory_space<vmem>>, vector<8x32xf32>
    %c0_2 = arith.constant 0 : index
    %c0_3 = arith.constant 0 : index
    %4 = vector.load %arg3[%c0_2, %c0_3] : memref<32x128xf32, #tpu.memory_space<vmem>>, vector<32x128xf32>
    %cst = arith.constant dense<0.000000e+00> : vector<8x128xf32>
    %5 = tpu.matmul %3, %4, %cst {dimension_numbers = #tpu.dot_dimension_numbers<[1], [0], [0], [1], [0, 0, 1, 1], [], []>, precision = #tpu.contract_precision<fp32>} : vector<8x32xf32>, vector<32x128xf32>, vector<8x128xf32> -> vector<8x128xf32>
    %c0_4 = arith.constant 0 : index
    %c0_5 = arith.constant 0 : index
    %6 = vector.load %arg4[%c0_4, %c0_5] : memref<1x128xf32, #tpu.memory_space<vmem>>, vector<1x128xf32>
    %7 = vector.broadcast %6 : vector<1x128xf32> to vector<8x128xf32>
    %8 = arith.addf %5, %7 : vector<8x128xf32>
    %cst_6 = arith.constant 0.000000e+00 : f32
    %9 = vector.broadcast %cst_6 : f32 to vector<8x128xf32>
    %10 = arith.maximumf %8, %9 : vector<8x128xf32>
    %c0_7 = arith.constant 0 : index
    %c0_8 = arith.constant 0 : index
    %11 = vector.load %arg8[%c0_7, %c0_8] : memref<8x32xf32, #tpu.memory_space<vmem>>, vector<8x32xf32>
    %c0_9 = arith.constant 0 : index
    %c0_10 = arith.constant 0 : index
    %12 = vector.load %arg5[%c0_9, %c0_10] : memref<128x32xf32, #tpu.memory_space<vmem>>, vector<128x32xf32>
    %cst_11 = arith.constant dense<0.000000e+00> : vector<8x32xf32>
    %13 = tpu.matmul %10, %12, %cst_11 {dimension_numbers = #tpu.dot_dimension_numbers<[1], [0], [0], [1], [0, 0, 1, 1], [], []>, precision = #tpu.contract_precision<fp32>} : vector<8x128xf32>, vector<128x32xf32>, vector<8x32xf32> -> vector<8x32xf32>
    %14 = arith.addf %11, %13 : vector<8x32xf32>
    %c0_12 = arith.constant 0 : index
    %c0_13 = arith.constant 0 : index
    %15 = vector.load %arg8[%c0_12, %c0_13] : memref<8x32xf32, #tpu.memory_space<vmem>>, vector<8x32xf32>
    tpu.vector_store %arg8[%c0_12, %c0_13], %14 {strides = array<i32>} : memref<8x32xf32, #tpu.memory_space<vmem>>, vector<8x32xf32>,
    %c1_i32 = arith.constant 1 : i32
    %16 = arith.cmpi eq, %arg1, %c1_i32 : i32
    %17 = arith.extui %16 : i1 to i32
    %c0_i32_14 = arith.constant 0 : i32
    %18 = arith.cmpi ne, %17, %c0_i32_14 : i32
    scf.if %18 {
      %c0_15 = arith.constant 0 : index
      %c0_16 = arith.constant 0 : index
      %19 = vector.load %arg8[%c0_15, %c0_16] : memref<8x32xf32, #tpu.memory_space<vmem>>, vector<8x32xf32>
      %c0_17 = arith.constant 0 : index
      %c0_18 = arith.constant 0 : index
      %20 = vector.load %arg6[%c0_17, %c0_18] : memref<1x32xf32, #tpu.memory_space<vmem>>, vector<1x32xf32>
      %21 = vector.broadcast %20 : vector<1x32xf32> to vector<8x32xf32>
      %22 = arith.addf %19, %21 : vector<8x32xf32>
      %c0_19 = arith.constant 0 : index
      %c0_20 = arith.constant 0 : index
      %23 = vector.load %arg7[%c0_19, %c0_20] : memref<8x32xf32, #tpu.memory_space<vmem>>, vector<8x32xf32>
      tpu.vector_store %arg7[%c0_19, %c0_20], %22 {strides = array<i32>} : memref<8x32xf32, #tpu.memory_space<vmem>>, vector<8x32xf32>,
    } else {
    }
    return
  }
  func.func @transform_0(%arg0: i32, %arg1: i32) -> (i32, i32) {
    %c0_i32 = arith.constant 0 : i32
    %c0_i32_0 = arith.constant 0 : i32
    return %arg0, %c0_i32 : i32, i32
  }
  func.func @transform_1(%arg0: i32, %arg1: i32) -> (i32, i32) {
    %c0_i32 = arith.constant 0 : i32
    %c0_i32_0 = arith.constant 0 : i32
    return %c0_i32, %arg1 : i32, i32
  }
  func.func @transform_2(%arg0: i32, %arg1: i32) -> (i32, i32) {
    %c0_i32 = arith.constant 0 : i32
    %c0_i32_0 = arith.constant 0 : i32
    return %c0_i32, %arg1 : i32, i32
  }
  func.func @transform_3(%arg0: i32, %arg1: i32) -> (i32, i32) {
    %c0_i32 = arith.constant 0 : i32
    %c0_i32_0 = arith.constant 0 : i32
    return %arg1, %c0_i32 : i32, i32
  }
  func.func @transform_4(%arg0: i32, %arg1: i32) -> (i32, i32) {
    %c0_i32 = arith.constant 0 : i32
    %c0_i32_0 = arith.constant 0 : i32
    %c0_i32_1 = arith.constant 0 : i32
    return %c0_i32, %c0_i32_0 : i32, i32
  }
  func.func @transform_5(%arg0: i32, %arg1: i32) -> (i32, i32) {
    %c0_i32 = arith.constant 0 : i32
    %c0_i32_0 = arith.constant 0 : i32
    return %arg0, %c0_i32 : i32, i32
  }
}

</mosaic_0001>

<bundles_post_ra>
// kernel: tpu_custom_call.1
= control target key start
LH: loop header
LB: loop body
LE: loop exit
PB: predicated region body
PF: predicated region fallthrough
CT: control target
= control target key end

     0   :  { %s1766_s0 = inlined_call_operand.vmem [shape: f32[16,32], index: 0, kind: input, shape index: {}]   ;;  %s1767_s1 = inlined_call_operand.vmem [shape: f32[32,256], index: 1, kind: input, shape index: {}]   ;;  %s1768_s2 = inlined_call_operand.vmem [shape: f32[1,256], index: 2, kind: input, shape index: {}]   ;;  %s1769_s3 = inlined_call_operand.vmem [shape: f32[256,32], index: 3, kind: input, shape index: {}]   ;;  %s1770_s4 = inlined_call_operand.vmem [shape: f32[1,32], index: 4, kind: input, shape index: {}]   ;;  %s1771_s5 = inlined_call_operand.hbm [shape: f32[16,32], index: 5, kind: output, shape index: {}]  }
   0x1   :  { %1778 = sst [smem:[#allocation14_spill]] %s1767_s1 }
   0x2   :  { %10 = vsyncpa [#allocation5], 0 }
   0x3   :  { %12 = vsyncpa [#allocation5 + $0x1], 0  ;;  %s1287_s18 = smov 0   ;;  %s1289_s19 = smov 0  }
   0x4   :  { %s1291_s20 = smov 0   ;;  %s1293_s21 = smov 0  }
   0x5   :  { %s1295_s22 = smov 0   ;;  %s1297_s23 = smov 0  }
   0x6   :  { %s1299_s24 = smov 0   ;;  %s1301_s25 = smov 0  }
   0x7   :  { %s1303_s26 = smov 0   ;;  %s1305_s27 = smov 0  }
   0x8 LB: > { %1779 = sst [smem:[#allocation7_spill]] %s1234_s22  ;;  %s1036_s28 = sadd.s32 4294967295, %s1254_s27   ;;  %s1254_s27 = sphi %s1305_s27, %s18_s27   ;;  %s1250_s26 = sphi %s1303_s26, %s1797_s26   ;;  %s1246_s25 = sphi %s1301_s25, %s1796_s25   ;;  %s1242_s24 = sphi %s1299_s24, %s1795_s24   ;;  %s1238_s23 = sphi %s1297_s23, %s1794_s23   ;;  %s1234_s22 = sphi %s1295_s22, %s1801_s22   ;;  %s1230_s21 = sphi %s1293_s21, %s1792_s21   ;;  %s1226_s20 = sphi %s1291_s20, %s1800_s20   ;;  %s1222_s19 = sphi %s1289_s19, %s1799_s19   ;;  %s1218_s18 = sphi %s1287_s18, %s1798_s18  }
   0x9   : > { %1780 = sst [smem:[#allocation8_spill]] %s1246_s25  ;;  %s1037_s29 = sadd.s32 4294967294, %s1254_s27  }
   0xa   : > { %1781 = sst [smem:[#allocation9_spill]] %s1250_s26  ;;  %s27_s30 = sadd.s32 1, %s1246_s25 }
   0xb   : > { %s30_s6 = sadd.s32 1, %s1250_s26  ;;  %p28_p0 = scmp.ge.s32.totalorder %s27_s30, 2 }
   0xc   : > { %s63_s7 = sadd.s32 1, %s1234_s22  ;;  %p70_p1 = scmp.ne.s32.totalorder %s1234_s22, %s1230_s21 }
   0xd   : > { %p71_p2 = scmp.eq.s32.totalorder %s1254_s27, 0  ;;  %s1803_s30 = smov (%p28_p0, %s27_s30), 0 }
   0xe   : > { %1782 = sst [smem:[#allocation10_spill]] %s1803_s30  ;;  %s1805_s6 = smov (!%p28_p0, %s30_s6), %s1250_s26 }
   0xf   : > { %s60_s8 = ssub.s32 %s1246_s25, %s1803_s30  ;;  %p1350_p3 = por %p71_p2, %p70_p1 }
  0x10   : > { %p32_p4 = scmp.ge.s32.totalorder %s1805_s6, 2  ;;  %p61_p5 = scmp.eq.s32.totalorder %s60_s8, 0 }
  0x11   : > { %s162_s10 = sadd.s32 1, %s1226_s20  ;;  %p172_p6 = scmp.ne.s32.totalorder %s1226_s20, %s1222_s19 }
  0x12   : > { %s1807_s6 = smov (%p32_p4, %s1805_s6), 0  ;;  %p173_p7 = scmp.eq.s32.totalorder %s1036_s28, 3 }
  0x13   : > { %1784 = sst [smem:[#allocation11_spill]] %s1807_s6  ;;  %s159_s12 = ssub.s32 %s1250_s26, %s1807_s6 }
  0x14   : > { %s1360_s11 = scalar_select %p61_p5, %s1234_s22, %s63_s7  }
  0x15   : > { %p160_p8 = scmp.eq.s32.totalorder %s159_s12, 0  ;;  %p178_p9 = scmp.ne.s32.totalorder %s1222_s19, %s1218_s18 }
  0x16   : > { %1785 = sst [smem:[#allocation12_spill]] %s1360_s11  ;;  %p1366_p10 = por %p173_p7, %p172_p6 }
  0x17   : > { %p179_p11 = scmp.eq.s32.totalorder %s1037_s29, 3  ;;  %p1039_p13 = scmp.ge.s32.totalorder %s1254_s27, 4 }
  0x18   : > { %s1371_s14 = scalar_select %p160_p8, %s1226_s20, %s162_s10  }
  0x19   : > { %p1373_p12 = por %p179_p11, %p178_p9  ;;  %198 = sbr.rel (%p1039_p13) target bundleno = 44 (0x2c), region = 20 }
  0x1a   : > { %1787 = sst [smem:[#allocation13_spill]] %s1371_s14 }
  0x1e   : > { %208 = sbr.rel (!%p1350_p3) target bundleno = 44 (0x2c), region = 28  ;;  %s210_s16 = sand.u32 (%p1350_p3), 1, %s1234_s22  }
  0x1f   : > { %s1041_s17 = sshll.u32 (%p1350_p3), %s1246_s25, 3  ;;  %s1040_s28 = sshll.u32 (%p1350_p3), %s210_s16, 5 }
  0x20   : > { %s1789_s1 = sld [smem:[#allocation14_spill]] (%p1350_p3)  ;;  %s212_s10 = scalar_lea.vmem (%p1350_p3), [#allocation3], %s1040_s28 }
  0x26   : > { %s214_s29 = scalar_lea.vmem %s1789_s1, %s1041_s17 }
  0x27   : > { %v249_v0 = vld [vmem:[%s214_s29] sm:$0xff]  ;;  %v251_v1 = vld [vmem:[%s214_s29 + $0x10] sm:$0xff] }
  0x28   : > { %v253_v2 = vld [vmem:[%s214_s29 + $0x20] sm:$0xff]  ;;  %250 = vst [vmem:[%s212_s10] sm:$0xff] %v249_v0  ;;  %v255_v3 = vld [vmem:[%s214_s29 + $0x30] sm:$0xff] }
  0x29   : > { %252 = vst [vmem:[%s212_s10 + $0x8] sm:$0xff] %v251_v1 }
  0x2a   : > { %254 = vst [vmem:[%s212_s10 + $0x10] sm:$0xff] %v253_v2 }
  0x2b   : > { %256 = vst [vmem:[%s212_s10 + $0x18] sm:$0xff] %v255_v3 }
  0x2c PF: > { %p1042_p0 = scmp.ge.s32.totalorder %s1254_s27, 1  ;;  %p276_p1 = scmp.lt.s32.totalorder %s1254_s27, 5 }
  0x2e   : > { %p277_p2 = pnand %p1042_p0, %p276_p1 }
  0x2f   : > { %s283_s9 = sand.u32 (!%p277_p2), 1, %s1230_s21   ;;  %s1774_s12 = sand.u32 (!%p277_p2), 1, %s1222_s19  }
  0x30   : > { %280 = sbr.rel (%p277_p2) target bundleno = 410 (0x19a), region = 74  ;;  %s1043_s16 = sshll.u32 (!%p277_p2), %s283_s9, 5 }
  0x31   : > { %s1391_s17 = sshll.u32 (!%p277_p2), %s1774_s12, 3  ;;  %p322_p3 = scmp.lt.s32.totalorder (!%p277_p2), %s1242_s24, 1 }
  0x32   : > { %p326_p4 = scmp.lt.s32.totalorder (!%p277_p2), %s1238_s23, 1  ;;  %s1046_s28 = sshll.u32 (!%p277_p2), %s1238_s23, 4 }
  0x33   : > { %p330_p5 = scmp.lt.s32.totalorder (!%p277_p2), %s1046_s28, 31  ;;  %s285_s22 = scalar_lea.vmem (!%p277_p2), [#allocation3], %s1043_s16 }
  0x34   : > { %s321_s14 = scalar_lea.vmem (!%p277_p2), [#allocation4], %s1391_s17  ;;  %p1048_p6 = scmp.ne.s32.totalorder (!%p277_p2), %s1238_s23, 0 }
  0x35   : > { %s323_s7 = scalar_select %p322_p3, %s1242_s24, 1 }
  0x36   : > { %s1398_s8 = scalar_select %p326_p4, %s1238_s23, 1 }
  0x37   : > { %s1045_s29 = sshll.u32 %s323_s7, 3  ;;  %s1809_s28 = smov (!%p330_p5, %s1046_s28), 31 }
  0x38   : > { %s325_s6 = scalar_lea.vmem %s1766_s0, %s1045_s29  ;;  %s328_s9 = scalar_lea.vmem %s1768_s2, %s1398_s8 }
  0x39   : > { %s1047_s12 = sshll.u32 %s1809_s28, 3  ;;  %338 = sbr.rel (%p1048_p6) target bundleno = 64 (0x40), region = 82 }
  0x3a   : > { %s1410_s11 = scalar_lea.vmem %s1769_s3, %s1047_s12 }
  0x3e   : > { %vm339_vm0 = vcmask 261120   ;;  %v1256_v4 = vmov 0.0  }
  0x3f   : > { %340 = vst.msk [vmem:[#allocation2] sm:$0xff] %vm339_vm0, %v1256_v4 }
  0x40 PF: > { %v345_v5 = vld [vmem:[%s285_s22 + $0x18] sm:$0xff]  ;;  %v344_v6 = vld [vmem:[%s285_s22 + $0x10] sm:$0xff]  ;;  %v343_v7 = vld [vmem:[%s285_s22 + $0x8] sm:$0xff]  ;;  %vm350_vm1 = vcmask 261120   ;;  %p1049_p7 = scmp.ne.s32.totalorder %s1238_s23, 1 }
  0x41   : > { %v1414_v8 = vand.u32 4294901760, %v345_v5  ;;  %v1416_v9 = vand.u32 4294901760, %v344_v6  ;;  %v1418_v10 = vand.u32 4294901760, %v343_v7  ;;  %v342_v11 = vld [vmem:[%s285_s22] sm:$0xff]  ;;  %v341_v12 = vld [vmem:[%s325_s6] sm:$0xff]  ;;  %v556_v15 = vld [vmem:[%s1410_s11 + $0x78] sm:$0xff] }
  0x42   : > { %v1420_v13 = vand.u32 4294901760, %v342_v11  ;;  %v352_v14 = vsel %vm350_vm1, %v341_v12, 0  ;;  %v555_v16 = vld [vmem:[%s1410_s11 + $0x70] sm:$0xff]  ;;  %v554_v17 = vld [vmem:[%s1410_s11 + $0x68] sm:$0xff]  ;;  %v1441_v23 = vand.u32 4294901760, %v556_v15  ;;  %v553_v42 = vld [vmem:[%s1410_s11 + $0x60] sm:$0xff] }
  0x43   : > { %367 = vmatpush.msra.mxu0 %v1414_v8  ;;  %v1428_v18 = vsub.f32 %v345_v5, %v1414_v8  ;;  %v1430_v19 = vand.u32 4294901760, %v352_v14  ;;  %v1433_v20 = vsub.f32 %v344_v6, %v1416_v9  ;;  %v1436_v21 = vsub.f32 %v343_v7, %v1418_v10  ;;  %v552_v43 = vld [vmem:[%s1410_s11 + $0x58] sm:$0xff]  ;;  %v551_v44 = vld [vmem:[%s1410_s11 + $0x50] sm:$0xff]  ;;  %v550_v48 = vld [vmem:[%s1410_s11 + $0x48] sm:$0xff] }
  0x44   : > { %v1439_v22 = vsub.f32 %v342_v11, %v1420_v13  ;;  %v1443_v24 = vand.u32 4294901760, %v555_v16  ;;  %v1445_v25 = vand.u32 4294901760, %v554_v17  ;;  %v1456_v31 = vsub.f32 %v556_v15, %v1441_v23  ;;  %558 = vmatpush.msra.mxu2 %v1441_v23  ;;  %v549_v53 = vld [vmem:[%s1410_s11 + $0x40] sm:$0xff]  ;;  %v548_v58 = vld [vmem:[%s1410_s11 + $0x38] sm:$0xff]  ;;  %v547_v59 = vld [vmem:[%s1410_s11 + $0x30] sm:$0xff] }
  0x45   : > { %369 = vmatpush.msra.mxu0 %v1416_v9  ;;  %v397_v26 = vand.u32 4294901760, %v1428_v18  ;;  %v1450_v27 = vsub.f32 %v352_v14, %v1430_v19  ;;  %v403_v28 = vand.u32 4294901760, %v1433_v20  ;;  %v409_v29 = vand.u32 4294901760, %v1436_v21  ;;  %v546_v4 = vld [vmem:[%s1410_s11 + $0x28] sm:$0xff] }
  0x46   : > { %v415_v30 = vand.u32 4294901760, %v1439_v22  ;;  %v1459_v32 = vsub.f32 %v555_v16, %v1443_v24  ;;  %v1462_v33 = vsub.f32 %v554_v17, %v1445_v25  ;;  %v600_v39 = vand.u32 4294901760, %v1456_v31  ;;  %560 = vmatpush.msra.mxu2 %v1443_v24 }
  0x47   : > { %371 = vmatpush.msra.mxu0 %v1418_v10  ;;  %v398_v34 = vsub.f32 %v1428_v18, %v397_v26  ;;  %v376_v35 = vand.u32 4294901760, %v1450_v27  ;;  %v404_v36 = vsub.f32 %v1433_v20, %v403_v28  ;;  %v410_v37 = vsub.f32 %v1436_v21, %v409_v29 }
  0x48   : > { %v416_v38 = vsub.f32 %v1439_v22, %v415_v30  ;;  %v606_v40 = vand.u32 4294901760, %v1459_v32  ;;  %v612_v41 = vand.u32 4294901760, %v1462_v33  ;;  %v601_v50 = vsub.f32 %v1456_v31, %v600_v39  ;;  %562 = vmatpush.msra.mxu2 %v1445_v25 }
  0x49   : > { %373 = vmatpush.msra.mxu0 %v1420_v13  ;;  %v399_v45 = vand.u32 4294901760, %v398_v34  ;;  %v377_v46 = vsub.f32 %v1450_v27, %v376_v35  ;;  %v405_v47 = vand.u32 4294901760, %v404_v36  ;;  %v411_v49 = vand.u32 4294901760, %v410_v37 }
  0x4a   : > { %v607_v51 = vsub.f32 %v1459_v32, %v606_v40  ;;  %v613_v52 = vsub.f32 %v1462_v33, %v612_v41  ;;  %v1503_v55 = vand.u32 4294901760, %v553_v42  ;;  %v1505_v56 = vand.u32 4294901760, %v552_v43 }
  0x4b   : > { %438 = vmatpush.msrb.mxu0 %v1428_v18  ;;  %400 = vmatpush.msra.mxu1 %v399_v45  ;;  %v378_v54 = vand.u32 4294901760, %v377_v46  ;;  %v1507_v57 = vand.u32 4294901760, %v551_v44  ;;  %v417_v60 = vand.u32 4294901760, %v416_v38  ;;  %v602_v61 = vand.u32 4294901760, %v601_v50 }
  0x4c   : > { %v608_v62 = vand.u32 4294901760, %v607_v51  ;;  %v1512_v63 = vand.u32 4294901760, %v550_v48  ;;  %v1515_v0 = vsub.f32 %v553_v42, %v1503_v55  ;;  %v1518_v1 = vsub.f32 %v552_v43, %v1505_v56  ;;  %564 = vmatpush.msra.mxu2 %v1503_v55 }
  0x4d   : > { %441 = vmatpush.msrb.mxu0 %v1433_v20  ;;  %406 = vmatpush.msra.mxu1 %v405_v47  ;;  %v1521_v2 = vsub.f32 %v551_v44, %v1507_v57  ;;  %v1523_v3 = vand.u32 4294901760, %v549_v53  ;;  %v614_v5 = vand.u32 4294901760, %v613_v52  ;;  %v1530_v7 = vand.u32 4294901760, %v548_v58  ;;  %v544_v44 = vld [vmem:[%s1410_s11 + $0x18] sm:$0xff] }
  0x4e   : > { %379 = vmatmul.f32.vlgmr.msra.gmra.mxu0 %v378_v54  ;;  %603 = vmatpush.msra.mxu3 %v602_v61  ;;  %v1528_v6 = vsub.f32 %v550_v48, %v1512_v63  ;;  %v1532_v11 = vand.u32 4294901760, %v547_v59  ;;  %v618_v12 = vand.u32 4294901760, %v1515_v0  ;;  %v624_v14 = vand.u32 4294901760, %v1518_v1 }
  0x4f   : > { %444 = vmatpush.msrb.mxu0 %v1436_v21  ;;  %412 = vmatpush.msra.mxu1 %v411_v49  ;;  %v630_v15 = vand.u32 4294901760, %v1521_v2  ;;  %v1539_v16 = vsub.f32 %v549_v53, %v1523_v3  ;;  %v1544_v34 = vsub.f32 %v548_v58, %v1530_v7  ;;  %v1546_v36 = vand.u32 4294901760, %v546_v4 }
  0x50   : > { %609 = vmatpush.msra.mxu3 %v608_v62  ;;  %v636_v17 = vand.u32 4294901760, %v1528_v6  ;;  %v619_v37 = vsub.f32 %v1515_v0, %v618_v12  ;;  %v625_v38 = vsub.f32 %v1518_v1, %v624_v14  ;;  %v1562_v18 = vsub.f32 %v547_v59, %v1532_v11  ;;  %566 = vmatpush.msra.mxu2 %v1505_v56 }
  0x51   : > { %447 = vmatpush.msrb.mxu0 %v1439_v22  ;;  %418 = vmatpush.msra.mxu1 %v417_v60  ;;  %v631_v42 = vsub.f32 %v1521_v2, %v630_v15  ;;  %v642_v43 = vand.u32 4294901760, %v1539_v16  ;;  %v648_v48 = vand.u32 4294901760, %v1544_v34  ;;  %v1575_v49 = vsub.f32 %v546_v4, %v1546_v36 }
  0x52   : > { %420 = vmatmul.f32.vlgmr.msra.gmra.mxu1 %v1430_v19  ;;  %615 = vmatpush.msra.mxu3 %v614_v5  ;;  %v620_v45 = vand.u32 4294901760, %v619_v37  ;;  %v626_v46 = vand.u32 4294901760, %v625_v38  ;;  %v637_v47 = vsub.f32 %v1528_v6, %v636_v17  ;;  %v1581_v20 = vand.u32 4294901760, %v544_v44  ;;  %v542_v5 = vld [vmem:[%s1410_s11 + $0x8] sm:$0xff] }
  0x53   : > { %496 = vmatpush.msra.mxu0 %v397_v26  ;;  %v545_v26 = vld [vmem:[%s1410_s11 + $0x20] sm:$0xff]  ;;  %467 = vmatpush.msrb.mxu1 %v1414_v8  ;;  %v643_v51 = vsub.f32 %v1539_v16, %v642_v43  ;;  %v654_v52 = vand.u32 4294901760, %v1562_v18  ;;  %v660_v54 = vand.u32 4294901760, %v1575_v49  ;;  %v585_v38 = vand.u32 4294901760, %v542_v5 }
  0x54   : > { %v1579_v50 = vand.u32 4294901760, %v545_v26  ;;  %621 = vmatpush.msra.mxu3 %v620_v45  ;;  %568 = vmatpush.msra.mxu2 %v1507_v57  ;;  %v638_v21 = vand.u32 4294901760, %v637_v47  ;;  %v1601_v58 = vsub.f32 %v544_v44, %v1581_v20 }
  0x55   : > { %500 = vmatpush.msra.mxu0 %v403_v28  ;;  %469 = vmatpush.msrb.mxu1 %v1416_v9  ;;  %v632_v28 = vand.u32 4294901760, %v631_v42  ;;  %v644_v22 = vand.u32 4294901760, %v643_v51  ;;  %v661_v61 = vsub.f32 %v1575_v49, %v660_v54  ;;  %v541_v42 = vld [vmem:[%s1410_s11] sm:$0xff]  ;;  %v683_v44 = vsub.f32 %v542_v5, %v585_v38 }
  0x56   : > { %450 = vmatmul.f32.vlgmr.msrb.gmra.mxu0 %v1450_v27  ;;  %v1592_v53 = vsub.f32 %v545_v26, %v1579_v50  ;;  %627 = vmatpush.msra.mxu3 %v626_v46  ;;  %v672_v27 = vand.u32 4294901760, %v1601_v58  ;;  %v587_v45 = vand.u32 4294901760, %v541_v42 }
  0x57   : > { %504 = vmatpush.msra.mxu0 %v409_v29  ;;  %471 = vmatpush.msrb.mxu1 %v1418_v10  ;;  %v649_v29 = vsub.f32 %v1544_v34, %v648_v48  ;;  %v662_v62 = vand.u32 4294901760, %v661_v61  ;;  %v684_v47 = vand.u32 4294901760, %v683_v44 }
  0x58   : > { %570 = vmatpush.msra.mxu2 %v1512_v63  ;;  %633 = vmatpush.msra.mxu3 %v632_v28  ;;  %v666_v59 = vand.u32 4294901760, %v1592_v53  ;;  %v673_v4 = vsub.f32 %v1601_v58, %v672_v27  ;;  %v689_v28 = vsub.f32 %v541_v42, %v587_v45 }
  0x59   : > { %508 = vmatpush.msra.mxu0 %v415_v30  ;;  %473 = vmatpush.msrb.mxu1 %v1420_v13  ;;  %v655_v30 = vsub.f32 %v1562_v18, %v654_v52  ;;  %v650_v60 = vand.u32 4294901760, %v649_v29 }
  0x5a   : > { %477 = vmatmul.f32.vlgmr.msrb.gmra.mxu1 %v376_v35  ;;  %572 = vmatpush.msra.mxu2 %v1523_v3  ;;  %v690_v29 = vand.u32 4294901760, %v689_v28 }
  0x5b   : > { %527 = vmatpush.msra.mxu1 %v1414_v8  ;;  %639 = vmatpush.msra.mxu3 %v638_v21  ;;  %v656_v35 = vand.u32 4294901760, %v655_v30  ;;  %v667_v8 = vsub.f32 %v1592_v53, %v666_v59  ;;  %v685_v21 = vsub.f32 %v683_v44, %v684_v47 }
  0x5c   : > { %701 = vmatpush.msrb.mxu0 %v1456_v31  ;;  %574 = vmatpush.msra.mxu2 %v1530_v7  ;;  %v691_v30 = vsub.f32 %v689_v28, %v690_v29 }
  0x5d   : > { %529 = vmatpush.msra.mxu1 %v1416_v9  ;;  %645 = vmatpush.msra.mxu3 %v644_v22  ;;  %v668_v9 = vand.u32 4294901760, %v667_v8  ;;  %v686_v22 = vand.u32 4294901760, %v685_v21 }
  0x5e   : > { %510 = vmatmul.f32.vlgmr.msra.gmra.mxu0 %v1430_v19  ;;  %576 = vmatpush.msra.mxu2 %v1532_v11 }
  0x5f   : > { %531 = vmatpush.msra.mxu1 %v1418_v10  ;;  %704 = vmatpush.msrb.mxu0 %v1459_v32  ;;  %v674_v10 = vand.u32 4294901760, %v673_v4 }
  0x60   : > { %651 = vmatpush.msra.mxu3 %v650_v60  ;;  %578 = vmatpush.msra.mxu2 %v1546_v36  ;;  %v692_v60 = vand.u32 4294901760, %v691_v30 }
  0x61   : > { %533 = vmatpush.msra.mxu1 %v1420_v13  ;;  %707 = vmatpush.msrb.mxu0 %v1462_v33  ;;  %v543_v13 = vld [vmem:[%s1410_s11 + $0x10] sm:$0xff] }
  0x62   : > { %535 = vmatmul.f32.vlgmr.msra.gmra.mxu1 %v1430_v19  ;;  %657 = vmatpush.msra.mxu3 %v656_v35  ;;  %v583_v19 = vand.u32 4294901760, %v543_v13 }
  0x63   : > { %754 = vmatpush.msrb.mxu1 %v1441_v23  ;;  %710 = vmatpush.msrb.mxu0 %v1515_v0 }
  0x64   : > { %663 = vmatpush.msra.mxu3 %v662_v62  ;;  %580 = vmatpush.msra.mxu2 %v1579_v50  ;;  %v677_v37 = vsub.f32 %v543_v13, %v583_v19 }
  0x65   : > { %756 = vmatpush.msrb.mxu1 %v1443_v24  ;;  %713 = vmatpush.msrb.mxu0 %v1518_v1 }
  0x66   : > { %669 = vmatpush.msra.mxu3 %v668_v9  ;;  %582 = vmatpush.msra.mxu2 %v1581_v20  ;;  %v678_v26 = vand.u32 4294901760, %v677_v37 }
  0x67   : > { %758 = vmatpush.msrb.mxu1 %v1445_v25  ;;  %716 = vmatpush.msrb.mxu0 %v1521_v2 }
  0x68   : > { %675 = vmatpush.msra.mxu3 %v674_v10  ;;  %584 = vmatpush.msra.mxu2 %v583_v19  ;;  %v679_v46 = vsub.f32 %v677_v37, %v678_v26 }
  0x69   : > { %760 = vmatpush.msrb.mxu1 %v1503_v55  ;;  %719 = vmatpush.msrb.mxu0 %v1528_v6 }
  0x6a   : > { %586 = vmatpush.msra.mxu2 %v585_v38  ;;  %v680_v51 = vand.u32 4294901760, %v679_v46 }
  0x6b   : > { %762 = vmatpush.msrb.mxu1 %v1505_v56  ;;  %722 = vmatpush.msrb.mxu0 %v1539_v16 }
  0x6c   : > { %588 = vmatpush.msra.mxu2 %v587_v45  ;;  %681 = vmatpush.msra.mxu3 %v680_v51 }
  0x6d   : > { %764 = vmatpush.msrb.mxu1 %v1507_v57  ;;  %725 = vmatpush.msrb.mxu0 %v1544_v34 }
  0x6e   : > { %795 = vmatpush.msrb.mxu2 %v600_v39  ;;  %687 = vmatpush.msra.mxu3 %v686_v22 }
  0x6f   : > { %766 = vmatpush.msrb.mxu1 %v1512_v63  ;;  %728 = vmatpush.msrb.mxu0 %v1562_v18 }
  0x70   : > { %799 = vmatpush.msrb.mxu2 %v606_v40  ;;  %693 = vmatpush.msra.mxu3 %v692_v60 }
  0x71   : > { %768 = vmatpush.msrb.mxu1 %v1523_v3  ;;  %731 = vmatpush.msrb.mxu0 %v1575_v49 }
  0x72   : > { %803 = vmatpush.msrb.mxu2 %v612_v41  ;;  %862 = vmatpush.msrb.mxu3 %v1441_v23 }
  0x73   : > { %770 = vmatpush.msrb.mxu1 %v1530_v7  ;;  %734 = vmatpush.msrb.mxu0 %v1592_v53 }
  0x74   : > { %807 = vmatpush.msrb.mxu2 %v618_v12  ;;  %864 = vmatpush.msrb.mxu3 %v1443_v24  ;;  %v1142_v24 = vld [vmem:[%s328_s9] ss:$0 sm:$0xff] }
  0x75   : > { %772 = vmatpush.msrb.mxu1 %v1532_v11  ;;  %737 = vmatpush.msrb.mxu0 %v1601_v58 }
  0x76   : > { %811 = vmatpush.msrb.mxu2 %v624_v14  ;;  %866 = vmatpush.msrb.mxu3 %v1445_v25 }
  0x77   : > { %774 = vmatpush.msrb.mxu1 %v1546_v36  ;;  %740 = vmatpush.msrb.mxu0 %v677_v37 }
  0x78   : > { %815 = vmatpush.msrb.mxu2 %v630_v15  ;;  %868 = vmatpush.msrb.mxu3 %v1503_v55 }
  0x79   : > { %776 = vmatpush.msrb.mxu1 %v1579_v50  ;;  %743 = vmatpush.msrb.mxu0 %v683_v44 }
  0x7a   : > { %819 = vmatpush.msrb.mxu2 %v636_v17  ;;  %870 = vmatpush.msrb.mxu3 %v1505_v56 }
  0x7b   : > { %778 = vmatpush.msrb.mxu1 %v1581_v20  ;;  %746 = vmatpush.msrb.mxu0 %v689_v28 }
  0x7c   : > { %823 = vmatpush.msrb.mxu2 %v642_v43  ;;  %872 = vmatpush.msrb.mxu3 %v1507_v57 }
  0x7d   : > { %780 = vmatpush.msrb.mxu1 %v583_v19 }
  0x7e   : > { %827 = vmatpush.msrb.mxu2 %v648_v48  ;;  %874 = vmatpush.msrb.mxu3 %v1512_v63  ;;  %v540_v48 = vld [vmem:[#allocation2] sm:$0xff] }
  0x7f   : > { %782 = vmatpush.msrb.mxu1 %v585_v38 }
  0x80   : > { %831 = vmatpush.msrb.mxu2 %v654_v52  ;;  %876 = vmatpush.msrb.mxu3 %v1523_v3 }
  0x81   : > { %784 = vmatpush.msrb.mxu1 %v587_v45 }
  0x82   : > { %835 = vmatpush.msrb.mxu2 %v660_v54  ;;  %878 = vmatpush.msrb.mxu3 %v1530_v7 }
  0x84   : > { %839 = vmatpush.msrb.mxu2 %v666_v59  ;;  %880 = vmatpush.msrb.mxu3 %v1532_v11 }
  0x86   : > { %843 = vmatpush.msrb.mxu2 %v672_v27  ;;  %882 = vmatpush.msrb.mxu3 %v1546_v36 }
  0x88   : > { %847 = vmatpush.msrb.mxu2 %v678_v26  ;;  %884 = vmatpush.msrb.mxu3 %v1579_v50 }
  0x8a   : > { %851 = vmatpush.msrb.mxu2 %v684_v47  ;;  %886 = vmatpush.msrb.mxu3 %v1581_v20 }
  0x8c   : > { %855 = vmatpush.msrb.mxu2 %v690_v29  ;;  %888 = vmatpush.msrb.mxu3 %v583_v19 }
  0x8e   : > { %890 = vmatpush.msrb.mxu3 %v585_v38 }
  0x90   : > { %892 = vmatpush.msrb.mxu3 %v587_v45 }
  0xcb   : > { %v380_v23 = vpop.f32.mrf.mxu0 }
  0xcc   : > { %v381_v31 = vadd.f32 %v1142_v24, %v380_v23 }
  0xcf   : > { %v421_v25 = vpop.f32.mrf.mxu1 }
  0xd0   : > { %v422_v33 = vadd.f32 %v421_v25, %v381_v31 }
  0xd3   : > { %v451_v32 = vpop.f32.mrf.mxu0 }
  0xd4   : > { %v452_v40 = vadd.f32 %v451_v32, %v422_v33 }
  0xd7   : > { %v478_v39 = vpop.f32.mrf.mxu1 }
  0xd8   : > { %v479_v41 = vadd.f32 %v478_v39, %v452_v40 }
  0xdb   : > { %v511_v55 = vpop.f32.mrf.mxu0 }
  0xdc   : > { %v512_v56 = vadd.f32 %v511_v55, %v479_v41 }
  0xdf   : > { %v536_v57 = vpop.f32.mrf.mxu1 }
  0xe0   : > { %v537_v63 = vadd.f32 %v536_v57, %v512_v56 }
  0xe2   : > { %v539_v0 = vmax.f32 %v537_v63, 0.0 }
  0xe4   : > { %v589_v1 = vand.u32 4294901760, %v539_v0 }
  0xe6   : > { %v590_v2 = vsub.f32 %v539_v0, %v589_v1  ;;  %695 = vmatmul.f32.vlgmr.msra.gmra.mxu3 %v589_v1 }
  0xe8   : > { %749 = vmatmul.f32.vlgmr.msrb.gmra.mxu0 %v590_v2  ;;  %v591_v3 = vand.u32 4294901760, %v590_v2 }
  0xea   : > { %788 = vmatmul.f32.vlgmr.msrb.gmra.mxu1 %v591_v3  ;;  %v592_v6 = vsub.f32 %v590_v2, %v591_v3 }
  0xec   : > { %v593_v7 = vand.u32 4294901760, %v592_v6 }
  0xee   : > { %594 = vmatmul.f32.vlgmr.msra.gmra.mxu2 %v593_v7  ;;  %894 = vmatmul.f32.vlgmr.msrb.gmra.mxu3 %v589_v1 }
  0xf6   : > { %857 = vmatmul.f32.vlgmr.msrb.gmra.mxu2 %v589_v1 }
 0x165   : > { %v750_v15 = vpop.f32.mrf.mxu0 }
 0x167   : > { %v789_v17 = vpop.f32.mrf.mxu1 }
 0x169   : > { %v696_v11 = vpop.f32.mrf.mxu3 }
 0x171   : > { %v595_v12 = vpop.f32.mrf.mxu2  ;;  %v895_v18 = vpop.f32.mrf.mxu3 }
 0x172   : > { %v697_v14 = vadd.f32 %v696_v11, %v595_v12 }
 0x174   : > { %v751_v16 = vadd.f32 %v750_v15, %v697_v14 }
 0x176   : > { %v790_v34 = vadd.f32 %v789_v17, %v751_v16 }
 0x179   : > { %v858_v36 = vpop.f32.mrf.mxu2 }
 0x17a   : > { %v859_v43 = vadd.f32 %v858_v36, %v790_v34 }
 0x17c   : > { %v896_v49 = vadd.f32 %v895_v18, %v859_v43  ;;  %903 = sbr.rel (%p1049_p7) target bundleno = 395 (0x18b), region = 86 }
 0x17e   : > { %v898_v50 = vadd.f32 %v896_v49, %v540_v48 }
 0x180   : > { %899 = vst.msk [vmem:[#allocation2] sm:$0xff] %vm350_vm1, %v898_v50 }
 0x181   : > { %v1143_v52 = vld [vmem:[%s1770_s4] ss:$0 sm:$0xff] }
 0x187   : > { %v904_v20 = vld [vmem:[#allocation2] sm:$0xff] }
 0x188   : > { %v909_v53 = vadd.f32 %v1143_v52, %v904_v20 }
 0x18a   : > { %910 = vst.msk [vmem:[%s321_s14] sm:$0xff] %vm350_vm1, %v909_v53 }
 0x18b PF: > { %s1051_s30 = sshll.u32 %s1242_s24, 3  ;;  %s924_s12 = sshll.u32 %s321_s14, 4  ;;  %s925_s12 = int_to_ptr.vmem [resolvable:$true] %s924_s12 }
 0x18c   : > { %s922_s23 = scalar_lea.hbm %s1771_s5, %s1051_s30  ;;  %s1790_s28 = sand.u32 1, %s1222_s19  }
 0x18d   : > { %s926_s16 = sshll.u32 %s922_s23, 4  ;;  %s912_s7 = scalar_lea.sflag [#allocation5], %s1790_s28  ;;  %s927_s16 = int_to_ptr.hbm [resolvable:$true] %s926_s16 }
 0x18e   : > { %s1158_s8 = sshra.s32 %s927_s16, 4  ;;  %s1164_s21 = scalar_lea.hbm %s1771_s5, 16  ;;  %s1159_s8 = int_to_ptr.hbm [resolvable:$true] %s1158_s8 }
 0x18f   : > { %s1160_s29 = scalar_lea.hbm %s1159_s8, 8  ;;  %p1165_p13 = scmp.lt.s32.totalorder %s1159_s8, %s1771_s5 }
 0x190   : > { %p1161_p8 = scmp.ne.s32.totalorder %s1159_s8, %s1160_s29  ;;  %p1166_p0 = scmp.lt.s32.totalorder %s1164_s21, %s1160_s29 }
 0x192   : > { %p1162_p9 = pnand %p1161_p8, %p1366_p10  ;;  %p1167_p1 = por %p1166_p0, %p1165_p13 }
 0x194   : > { %p1163_p11 = pneg %p1162_p9 }
 0x196   : > { %p1168_p2 = pnand %p1167_p1, %p1163_p11 }
 0x198   : > { %1171 = shalt.err (!%p1168_p2)
}
 0x199   : > { %1054 = dma.vmem_to_hbm [thread:$0]  (%p1366_p10), %s925_s12, 128, %s927_s16, %s912_s7  }
 0x19a PF: > { %p1060_p3 = scmp.ge.s32.totalorder %s1254_s27, 2  ;;  %s938_s14 = sand.u32 1, %s1218_s18  }
 0x19b   : > { %s939_s17 = scalar_lea.sflag [#allocation5], %s938_s14 }
 0x19c   : > { %p1057_p4 = pnand %p1060_p3, %p1373_p12 }
 0x19e   : > { %p1058_p5 = pneg %p1057_p4 }
 0x1a0   : > { %1213 = dma.done.wait (%p1058_p5), %s939_s17, 128  }
 0x1a1   : > { %1215 = vsyncadd (%p1058_p5), %s939_s17, 4294967168  ;;  %s18_s27 = sadd.s32 1, %s1254_s27   ;;  %s1791_s22 = sld [smem:[#allocation13_spill]] }
 0x1a2   : > { %p15_p6 = scmp.ge.s32.totalorder %s18_s27, 6   ;;  %s1792_s21 = sld [smem:[#allocation7_spill]] }
 0x1a3   : > { %s1793_s13 = sld [smem:[#allocation12_spill]]  ;;  %s1798_s18 = smov %s1222_s19 }
 0x1a4   : > { %s1794_s23 = sld [smem:[#allocation8_spill]]  ;;  %s1799_s19 = smov %s1226_s20 }
 0x1a5   : > { %s1795_s24 = sld [smem:[#allocation9_spill]]  ;;  %17 = sbr.rel (!%p15_p6) target bundleno = 8 (0x8), region = 135 }
 0x1a6   : > { %s1796_s25 = sld [smem:[#allocation10_spill]] }
 0x1a7   : > { %s1797_s26 = sld [smem:[#allocation11_spill]]  ;;  %s1800_s20 = smov %s1791_s22 }
 0x1a9   : > { %s1801_s22 = smov %s1793_s13 }
 0x1aa   :  { %945 = vsyncpa [#allocation5], 1 }
 0x1ab   :  { %947 = vsyncpa [#allocation5 + $0x1], 1 }

</bundles_post_ra>
